<compile_context>
chip_gen: v5e
topology: v5e:2x2
jax: 0.10.0
libtpu: 0.0.40
codegen_flags: <defaults>
</compile_context>

<pallas_src>
import functools

import jax
import jax.numpy as jnp
import numpy as np
from jax import lax
from jax.experimental import pallas as pl
from jax.experimental.pallas import tpu as pltpu

L1_WEIGHT = 1.0
SSIM_WEIGHT = 0.84
CHARB_EPS = 1e-6          # torch reference: sqrt(diff*diff + 1e-6) — eps INSIDE the sqrt
KERNEL_SIZE = 11          # torchmetrics default
SIGMA = 1.5               # torchmetrics default
DATA_RANGE = 1.0
K1, K2 = 0.01, 0.03       # torchmetrics defaults


def _round_up(v, m):
    return ((v + m - 1) // m) * m


def _gaussian_1d_np(kernel_size=KERNEL_SIZE, sigma=SIGMA):
    # Same construction as torchmetrics._gaussian (normalized 1-D gaussian).
    dist = np.arange((1 - kernel_size) / 2.0, (1 + kernel_size) / 2.0, 1.0,
                     dtype=np.float32)
    g = np.exp(-((dist / sigma) ** 2) / 2.0)
    return (g / g.sum()).astype(np.float32)


def _toeplitz_right(n, taps, out_pad):
    """(n, out_pad) banded matrix T with T[i, j] = taps[i - j]; columns j >= n-K+1 are zero.

    (A @ T)[r, j] = sum_d taps[d] * A[r, j + d]  == valid 1-D gaussian along A's rows.
    """
    k = taps.shape[0]
    no = n - k + 1
    t = np.zeros((n, out_pad), np.float32)
    idx = np.arange(n)[:, None] - np.arange(no)[None, :]
    mask = (idx >= 0) & (idx < k)
    t[:, :no] = np.where(mask, taps[np.clip(idx, 0, k - 1)], np.float32(0.0))
    return t


def _toeplitz_left(n, taps, out_pad):
    """(out_pad, n) banded matrix T with T[o, i] = taps[i - o]; rows o >= n-K+1 are zero.

    (T @ B)[o, j] = sum_d taps[d] * B[o + d, j]  == valid 1-D gaussian along B's columns.
    """
    k = taps.shape[0]
    no = n - k + 1
    t = np.zeros((out_pad, n), np.float32)
    idx = np.arange(n)[None, :] - np.arange(no)[:, None]
    mask = (idx >= 0) & (idx < k)
    t[:no, :] = np.where(mask, taps[np.clip(idx, 0, k - 1)], np.float32(0.0))
    return t


def _l1_ssim_kernel(x_ref, y_ref, tw_ref, tht_ref, out_ref, *, ho, wo):
    # x_ref, y_ref : (T, H, W)    f32 VMEM  -- T image planes of this grid step
    # tw_ref       : (W, WO_pad)  f32 VMEM  -- horizontal gaussian Toeplitz (resident)
    # tht_ref      : (HO_pad, H)  f32 VMEM  -- vertical gaussian Toeplitz   (resident)
    # out_ref      : (1, 8, 128)  f32 VMEM  -- partials: sublane 0 = charbonnier, 1 = ssim
    f32 = jnp.float32
    x = x_ref[...]
    y = y_ref[...]
    t, h, w = x.shape
    tw = tw_ref[...]
    tht = tht_ref[...]
    hop = tht.shape[0]
    wop = tw.shape[1]

    # ---- Charbonnier L1 partial sum: sum(sqrt((x-y)^2 + eps)) over this tile ----
    diff = x - y
    l1_sum = jnp.sum(jnp.sqrt(diff * diff + CHARB_EPS))

    # ---- horizontal gaussian taps: one lane-dense MXU matmul per map (no concat) ----
    # TODO(synk): optionally zero-pad W (the matmul K dim) to 128 and/or cast the LHS to
    # bf16 once validated; kept f32 here to avoid sigma = E[x^2]-mu^2 cancellation issues.
    x2 = x.reshape(t * h, w)
    y2 = y.reshape(t * h, w)
    hb_x = jnp.dot(x2, tw, preferred_element_type=f32)        # (T*H, WO_pad)
    hb_y = jnp.dot(y2, tw, preferred_element_type=f32)
    hb_xx = jnp.dot(x2 * x2, tw, preferred_element_type=f32)
    hb_yy = jnp.dot(y2 * y2, tw, preferred_element_type=f32)
    hb_xy = jnp.dot(x2 * y2, tw, preferred_element_type=f32)

    c1 = (K1 * DATA_RANGE) ** 2
    c2 = (K2 * DATA_RANGE) ** 2

    # ---- vertical gaussian taps on the MXU + pointwise SSIM, per plane ----
    ssim_acc = jnp.zeros((hop, wop), f32)
    for i in range(t):                       # static unroll, tile_nc is small
        lo, hi = i * h, (i + 1) * h
        mu_x = jnp.dot(tht, hb_x[lo:hi, :], preferred_element_type=f32)   # (HO_pad, WO_pad)
        mu_y = jnp.dot(tht, hb_y[lo:hi, :], preferred_element_type=f32)
        e_xx = jnp.dot(tht, hb_xx[lo:hi, :], preferred_element_type=f32)
        e_yy = jnp.dot(tht, hb_yy[lo:hi, :], preferred_element_type=f32)
        e_xy = jnp.dot(tht, hb_xy[lo:hi, :], preferred_element_type=f32)

        sigma_xx = e_xx - mu_x * mu_x
        sigma_yy = e_yy - mu_y * mu_y
        sigma_xy = e_xy - mu_x * mu_y

        num = (2.0 * mu_x * mu_y + c1) * (2.0 * sigma_xy + c2)
        den = (mu_x * mu_x + mu_y * mu_y + c1) * (sigma_xx + sigma_yy + c2)
        r = pl.reciprocal(den, approx=True)          # EUP vrcp slot
        r = r * (2.0 - den * r)                      # one Newton step -> ~f32 accuracy
        ssim_acc = ssim_acc + num * r

    # Padded rows/cols of the blurred maps are exactly zero -> ssim == 1 there
    # (num = den = c1*c2); mask them out of the sum.
    row = lax.broadcasted_iota(jnp.int32, (hop, wop), 0)
    col = lax.broadcasted_iota(jnp.int32, (hop, wop), 1)
    valid = ((row < ho) & (col < wo)).astype(f32)
    ssim_sum = jnp.sum(ssim_acc * valid)

    # Lane-dense partial-sum block: sublane 0 <- l1_sum, sublane 1 <- ssim_sum.
    sub = lax.broadcasted_iota(jnp.int32, (1, 8, 128), 1)
    out_ref[...] = jnp.where(sub == 0, l1_sum,
                             jnp.where(sub == 1, ssim_sum, 0.0)).astype(f32)


def _pick_tile_nc(nc, h, w, hop, wop, vmem_limit):
    """Largest divisor of N*C whose per-step footprint fits; prefer an even grid (v7x)."""
    const_bytes = 2 * (w * wop + hop * h) * 4               # resident Toeplitz matrices
    budget = max(int(0.6 * vmem_limit) - const_bytes, 64 * 1024)
    per_plane = (7 * h * w + 5 * h * wop + 8 * hop * wop) * 4
    fitting = [d for d in range(1, min(nc, 8) + 1)
               if nc % d == 0 and d * per_plane <= budget] or [1]
    even = [d for d in fitting if (nc // d) >= 2 and (nc // d) % 2 == 0]
    return max(even) if even else max(fitting)


def l1_ssim_loss(x, y, *, tile_nc=None):
    """x, y: NCHW float32 images in [0, 1]. Returns (total, l1, ssim_loss)."""
    n, c, h, w = x.shape
    assert x.shape == y.shape
    assert h >= KERNEL_SIZE and w >= KERNEL_SIZE, "image must be >= gaussian window"
    nc = n * c
    pad = (KERNEL_SIZE - 1) // 2
    ho, wo = h - 2 * pad, w - 2 * pad
    hop = _round_up(ho, 8)          # sublane-aligned vertical-blur output
    wop = _round_up(wo, 128)        # lane-dense horizontal-blur output

    # Generation-aware VMEM budget: ~half the physical VMEM (32 MiB on v7x, 64 MiB on
    # v5e/v6e); conservative fallback if the query is unavailable.
    try:
        cap = int(getattr(pltpu.get_tpu_info(), "vmem_capacity_bytes", 0)) or (64 << 20)
    except Exception:
        cap = 64 << 20
    vmem_limit = int(max(24 << 20, min(cap // 2, 96 << 20)))

    if tile_nc is None:
        tile_nc = _pick_tile_nc(nc, h, w, hop, wop, vmem_limit)
    if nc % tile_nc != 0:
        raise ValueError(f"tile_nc={tile_nc} must divide N*C={nc}")
    num_tiles = nc // tile_nc
    # TODO(synk): tile H with a (K-1)=10-row halo (pl.ANY + manual make_async_copy) for
    # single planes too large for VMEM (e.g. 4K frames); current tiling splits N*C only.
    # TODO(synk): support a cdiv grid with a masked tail so prime N*C does not degrade
    # to tile_nc=1.

    x3 = x.reshape(nc, h, w).astype(jnp.float32)
    y3 = y.reshape(nc, h, w).astype(jnp.float32)

    taps = _gaussian_1d_np()
    tw = jnp.asarray(_toeplitz_right(w, taps, wop))    # (W, WO_pad)
    tht = jnp.asarray(_toeplitz_left(h, taps, hop))    # (HO_pad, H)

    kernel = functools.partial(_l1_ssim_kernel, ho=ho, wo=wo)

    cost = pl.CostEstimate(
        flops=int(2 * 5 * nc * h * w * wop           # horizontal Toeplitz matmuls
                  + 2 * 5 * nc * hop * h * wop       # vertical Toeplitz matmuls
                  + 10 * nc * h * w                  # charbonnier + map products
                  + 25 * nc * hop * wop),            # pointwise SSIM
        transcendentals=int(nc * h * w + nc * hop * wop),    # sqrt + reciprocal
        bytes_accessed=int(2 * nc * h * w * 4 + (w * wop + hop * h) * 4
                           + num_tiles * 8 * 128 * 4),
    )

    partial = pl.pallas_call(
        kernel,
        out_shape=jax.ShapeDtypeStruct((num_tiles, 8, 128), jnp.float32),
        grid_spec=pltpu.PrefetchScalarGridSpec(
            num_scalar_prefetch=0,
            grid=(num_tiles,),
            in_specs=[
                pl.BlockSpec((tile_nc, h, w), lambda i: (i, 0, 0)),   # x tile
                pl.BlockSpec((tile_nc, h, w), lambda i: (i, 0, 0)),   # y tile
                pl.BlockSpec((w, wop), lambda i: (0, 0)),             # horiz Toeplitz (resident)
                pl.BlockSpec((hop, h), lambda i: (0, 0)),             # vert Toeplitz (resident)
            ],
            out_specs=pl.BlockSpec((1, 8, 128), lambda i: (i, 0, 0)),
        ),
        compiler_params=pltpu.CompilerParams(
            dimension_semantics=("parallel",),
            vmem_limit_bytes=vmem_limit,
        ),
        cost_estimate=cost,
    )(x3, y3, tw, tht)

    # Tiny final reduction + weighting in JAX (keeps the grid axis parallel-safe;
    # no cross-step accumulator needed).
    l1 = jnp.sum(partial[:, 0, 0]) / float(nc * h * w)
    ssim_val = jnp.sum(partial[:, 1, 0]) / float(nc * ho * wo)
    ssim_loss = 1.0 - ssim_val
    total = L1_WEIGHT * l1 + SSIM_WEIGHT * ssim_loss
    return total, l1, ssim_loss


if __name__ == "__main__":
    key = jax.random.PRNGKey(0)
    kx, ky = jax.random.split(key)
    # Small NCHW shapes consistent with the module (data_range=1.0 images).
    x = jax.random.uniform(kx, (2, 4, 16, 16), dtype=jnp.float32)
    y = jax.random.uniform(ky, (2, 4, 16, 16), dtype=jnp.float32)

    # tile_nc=2 -> grid of 4 steps (even), exercising the pipelined / partial-sum path.
    total, l1, ssim_loss = l1_ssim_loss(x, y, tile_nc=2)
    jax.block_until_ready((total, l1, ssim_loss))
    print("KERNEL_OK")
</pallas_src>

<mosaic_0001>
module attributes {stable_mosaic.version = 11 : i64} {
  func.func @_l1_ssim_kernel(%arg0: i32, %arg1: memref<2x16x16xf32, #tpu.memory_space<vmem>>, %arg2: memref<2x16x16xf32, #tpu.memory_space<vmem>>, %arg3: memref<16x128xf32, #tpu.memory_space<vmem>>, %arg4: memref<8x16xf32, #tpu.memory_space<vmem>>, %arg5: memref<1x8x128xf32, #tpu.memory_space<vmem>>) attributes {dimension_semantics = [#tpu.dimension_semantics<parallel>], iteration_bounds = array<i64: 4>, scalar_prefetch = 0 : i64, scratch_operands = 0 : i64, tpu.core_type = #tpu.core_type<tc>, window_params = [{transform_indices = @transform_0, window_bounds = array<i64: 2, 16, 16>}, {transform_indices = @transform_1, window_bounds = array<i64: 2, 16, 16>}, {pipeline_mode = #tpu.pipeline_mode<synchronous>, transform_indices = @transform_2, window_bounds = array<i64: 16, 128>}, {pipeline_mode = #tpu.pipeline_mode<synchronous>, transform_indices = @transform_3, window_bounds = array<i64: 8, 16>}, {transform_indices = @transform_4, window_bounds = array<i64: 1, 8, 128>}]} {
    %c0 = arith.constant 0 : index
    %c0_0 = arith.constant 0 : index
    %c0_1 = arith.constant 0 : index
    %0 = vector.load %arg1[%c0, %c0_0, %c0_1] : memref<2x16x16xf32, #tpu.memory_space<vmem>>, vector<2x16x16xf32>
    %c0_2 = arith.constant 0 : index
    %c0_3 = arith.constant 0 : index
    %c0_4 = arith.constant 0 : index
    %1 = vector.load %arg2[%c0_2, %c0_3, %c0_4] : memref<2x16x16xf32, #tpu.memory_space<vmem>>, vector<2x16x16xf32>
    %c0_5 = arith.constant 0 : index
    %c0_6 = arith.constant 0 : index
    %2 = vector.load %arg3[%c0_5, %c0_6] : memref<16x128xf32, #tpu.memory_space<vmem>>, vector<16x128xf32>
    %c0_7 = arith.constant 0 : index
    %c0_8 = arith.constant 0 : index
    %3 = vector.load %arg4[%c0_7, %c0_8] : memref<8x16xf32, #tpu.memory_space<vmem>>, vector<8x16xf32>
    %4 = arith.subf %0, %1 : vector<2x16x16xf32>
    %5 = arith.mulf %4, %4 : vector<2x16x16xf32>
    %cst = arith.constant 9.99999997E-7 : f32
    %6 = vector.broadcast %cst : f32 to vector<2x16x16xf32>
    %7 = arith.addf %5, %6 : vector<2x16x16xf32>
    %8 = math.sqrt %7 : vector<2x16x16xf32>
    %9 = vector.shape_cast %8 : vector<2x16x16xf32> to vector<1x2x16x16xf32>
    %cst_9 = arith.constant dense<0.000000e+00> : vector<1xf32>
    %10 = vector.multi_reduction <add>, %9, %cst_9 [1, 2, 3] : vector<1x2x16x16xf32> to vector<1xf32>
    %11 = vector.shape_cast %10 : vector<1xf32> to vector<1x1x1x1xf32>
    %12 = vector.extract %11[0, 0, 0, 0] : f32 from vector<1x1x1x1xf32>
    %13 = vector.shape_cast %0 : vector<2x16x16xf32> to vector<32x16xf32>
    %14 = vector.shape_cast %1 : vector<2x16x16xf32> to vector<32x16xf32>
    %cst_10 = arith.constant dense<0.000000e+00> : vector<32x128xf32>
    %15 = tpu.matmul %13, %2, %cst_10 {dimension_numbers = #tpu.dot_dimension_numbers<[1], [0], [0], [1], [0, 0, 1, 1], [], []>} : vector<32x16xf32>, vector<16x128xf32>, vector<32x128xf32> -> vector<32x128xf32>
    %cst_11 = arith.constant dense<0.000000e+00> : vector<32x128xf32>
    %16 = tpu.matmul %14, %2, %cst_11 {dimension_numbers = #tpu.dot_dimension_numbers<[1], [0], [0], [1], [0, 0, 1, 1], [], []>} : vector<32x16xf32>, vector<16x128xf32>, vector<32x128xf32> -> vector<32x128xf32>
    %17 = arith.mulf %13, %13 : vector<32x16xf32>
    %cst_12 = arith.constant dense<0.000000e+00> : vector<32x128xf32>
    %18 = tpu.matmul %17, %2, %cst_12 {dimension_numbers = #tpu.dot_dimension_numbers<[1], [0], [0], [1], [0, 0, 1, 1], [], []>} : vector<32x16xf32>, vector<16x128xf32>, vector<32x128xf32> -> vector<32x128xf32>
    %19 = arith.mulf %14, %14 : vector<32x16xf32>
    %cst_13 = arith.constant dense<0.000000e+00> : vector<32x128xf32>
    %20 = tpu.matmul %19, %2, %cst_13 {dimension_numbers = #tpu.dot_dimension_numbers<[1], [0], [0], [1], [0, 0, 1, 1], [], []>} : vector<32x16xf32>, vector<16x128xf32>, vector<32x128xf32> -> vector<32x128xf32>
    %21 = arith.mulf %13, %14 : vector<32x16xf32>
    %cst_14 = arith.constant dense<0.000000e+00> : vector<32x128xf32>
    %22 = tpu.matmul %21, %2, %cst_14 {dimension_numbers = #tpu.dot_dimension_numbers<[1], [0], [0], [1], [0, 0, 1, 1], [], []>} : vector<32x16xf32>, vector<16x128xf32>, vector<32x128xf32> -> vector<32x128xf32>
    %cst_15 = arith.constant 0.000000e+00 : f32
    %23 = vector.broadcast %cst_15 : f32 to vector<8x128xf32>
    %24 = vector.extract_strided_slice %15 {offsets = [0, 0], sizes = [16, 128], strides = [1, 1]} : vector<32x128xf32> to vector<16x128xf32>
    %cst_16 = arith.constant dense<0.000000e+00> : vector<8x128xf32>
    %25 = tpu.matmul %3, %24, %cst_16 {dimension_numbers = #tpu.dot_dimension_numbers<[1], [0], [0], [1], [0, 0, 1, 1], [], []>} : vector<8x16xf32>, vector<16x128xf32>, vector<8x128xf32> -> vector<8x128xf32>
    %26 = vector.extract_strided_slice %16 {offsets = [0, 0], sizes = [16, 128], strides = [1, 1]} : vector<32x128xf32> to vector<16x128xf32>
    %cst_17 = arith.constant dense<0.000000e+00> : vector<8x128xf32>
    %27 = tpu.matmul %3, %26, %cst_17 {dimension_numbers = #tpu.dot_dimension_numbers<[1], [0], [0], [1], [0, 0, 1, 1], [], []>} : vector<8x16xf32>, vector<16x128xf32>, vector<8x128xf32> -> vector<8x128xf32>
    %28 = vector.extract_strided_slice %18 {offsets = [0, 0], sizes = [16, 128], strides = [1, 1]} : vector<32x128xf32> to vector<16x128xf32>
    %cst_18 = arith.constant dense<0.000000e+00> : vector<8x128xf32>
    %29 = tpu.matmul %3, %28, %cst_18 {dimension_numbers = #tpu.dot_dimension_numbers<[1], [0], [0], [1], [0, 0, 1, 1], [], []>} : vector<8x16xf32>, vector<16x128xf32>, vector<8x128xf32> -> vector<8x128xf32>
    %30 = vector.extract_strided_slice %20 {offsets = [0, 0], sizes = [16, 128], strides = [1, 1]} : vector<32x128xf32> to vector<16x128xf32>
    %cst_19 = arith.constant dense<0.000000e+00> : vector<8x128xf32>
    %31 = tpu.matmul %3, %30, %cst_19 {dimension_numbers = #tpu.dot_dimension_numbers<[1], [0], [0], [1], [0, 0, 1, 1], [], []>} : vector<8x16xf32>, vector<16x128xf32>, vector<8x128xf32> -> vector<8x128xf32>
    %32 = vector.extract_strided_slice %22 {offsets = [0, 0], sizes = [16, 128], strides = [1, 1]} : vector<32x128xf32> to vector<16x128xf32>
    %cst_20 = arith.constant dense<0.000000e+00> : vector<8x128xf32>
    %33 = tpu.matmul %3, %32, %cst_20 {dimension_numbers = #tpu.dot_dimension_numbers<[1], [0], [0], [1], [0, 0, 1, 1], [], []>} : vector<8x16xf32>, vector<16x128xf32>, vector<8x128xf32> -> vector<8x128xf32>
    %34 = arith.mulf %25, %25 : vector<8x128xf32>
    %35 = arith.subf %29, %34 : vector<8x128xf32>
    %36 = arith.mulf %27, %27 : vector<8x128xf32>
    %37 = arith.subf %31, %36 : vector<8x128xf32>
    %38 = arith.mulf %25, %27 : vector<8x128xf32>
    %39 = arith.subf %33, %38 : vector<8x128xf32>
    %cst_21 = arith.constant 2.000000e+00 : f32
    %40 = vector.broadcast %cst_21 : f32 to vector<8x128xf32>
    %41 = arith.mulf %40, %25 : vector<8x128xf32>
    %42 = arith.mulf %41, %27 : vector<8x128xf32>
    %cst_22 = arith.constant 9.99999974E-5 : f32
    %43 = vector.broadcast %cst_22 : f32 to vector<8x128xf32>
    %44 = arith.addf %42, %43 : vector<8x128xf32>
    %cst_23 = arith.constant 2.000000e+00 : f32
    %45 = vector.broadcast %cst_23 : f32 to vector<8x128xf32>
    %46 = arith.mulf %45, %39 : vector<8x128xf32>
    %cst_24 = arith.constant 8.99999984E-4 : f32
    %47 = vector.broadcast %cst_24 : f32 to vector<8x128xf32>
    %48 = arith.addf %46, %47 : vector<8x128xf32>
    %49 = arith.mulf %44, %48 : vector<8x128xf32>
    %50 = arith.mulf %25, %25 : vector<8x128xf32>
    %51 = arith.mulf %27, %27 : vector<8x128xf32>
    %52 = arith.addf %50, %51 : vector<8x128xf32>
    %cst_25 = arith.constant 9.99999974E-5 : f32
    %53 = vector.broadcast %cst_25 : f32 to vector<8x128xf32>
    %54 = arith.addf %52, %53 : vector<8x128xf32>
    %55 = arith.addf %35, %37 : vector<8x128xf32>
    %cst_26 = arith.constant 8.99999984E-4 : f32
    %56 = vector.broadcast %cst_26 : f32 to vector<8x128xf32>
    %57 = arith.addf %55, %56 : vector<8x128xf32>
    %58 = arith.mulf %54, %57 : vector<8x128xf32>
    %59 = tpu.reciprocal %58 {approx = true} : vector<8x128xf32> -> vector<8x128xf32>
    %60 = arith.mulf %58, %59 : vector<8x128xf32>
    %cst_27 = arith.constant 2.000000e+00 : f32
    %61 = vector.broadcast %cst_27 : f32 to vector<8x128xf32>
    %62 = arith.subf %61, %60 : vector<8x128xf32>
    %63 = arith.mulf %59, %62 : vector<8x128xf32>
    %64 = arith.mulf %49, %63 : vector<8x128xf32>
    %65 = arith.addf %23, %64 : vector<8x128xf32>
    %66 = vector.extract_strided_slice %15 {offsets = [16, 0], sizes = [16, 128], strides = [1, 1]} : vector<32x128xf32> to vector<16x128xf32>
    %cst_28 = arith.constant dense<0.000000e+00> : vector<8x128xf32>
    %67 = tpu.matmul %3, %66, %cst_28 {dimension_numbers = #tpu.dot_dimension_numbers<[1], [0], [0], [1], [0, 0, 1, 1], [], []>} : vector<8x16xf32>, vector<16x128xf32>, vector<8x128xf32> -> vector<8x128xf32>
    %68 = vector.extract_strided_slice %16 {offsets = [16, 0], sizes = [16, 128], strides = [1, 1]} : vector<32x128xf32> to vector<16x128xf32>
    %cst_29 = arith.constant dense<0.000000e+00> : vector<8x128xf32>
    %69 = tpu.matmul %3, %68, %cst_29 {dimension_numbers = #tpu.dot_dimension_numbers<[1], [0], [0], [1], [0, 0, 1, 1], [], []>} : vector<8x16xf32>, vector<16x128xf32>, vector<8x128xf32> -> vector<8x128xf32>
    %70 = vector.extract_strided_slice %18 {offsets = [16, 0], sizes = [16, 128], strides = [1, 1]} : vector<32x128xf32> to vector<16x128xf32>
    %cst_30 = arith.constant dense<0.000000e+00> : vector<8x128xf32>
    %71 = tpu.matmul %3, %70, %cst_30 {dimension_numbers = #tpu.dot_dimension_numbers<[1], [0], [0], [1], [0, 0, 1, 1], [], []>} : vector<8x16xf32>, vector<16x128xf32>, vector<8x128xf32> -> vector<8x128xf32>
    %72 = vector.extract_strided_slice %20 {offsets = [16, 0], sizes = [16, 128], strides = [1, 1]} : vector<32x128xf32> to vector<16x128xf32>
    %cst_31 = arith.constant dense<0.000000e+00> : vector<8x128xf32>
    %73 = tpu.matmul %3, %72, %cst_31 {dimension_numbers = #tpu.dot_dimension_numbers<[1], [0], [0], [1], [0, 0, 1, 1], [], []>} : vector<8x16xf32>, vector<16x128xf32>, vector<8x128xf32> -> vector<8x128xf32>
    %74 = vector.extract_strided_slice %22 {offsets = [16, 0], sizes = [16, 128], strides = [1, 1]} : vector<32x128xf32> to vector<16x128xf32>
    %cst_32 = arith.constant dense<0.000000e+00> : vector<8x128xf32>
    %75 = tpu.matmul %3, %74, %cst_32 {dimension_numbers = #tpu.dot_dimension_numbers<[1], [0], [0], [1], [0, 0, 1, 1], [], []>} : vector<8x16xf32>, vector<16x128xf32>, vector<8x128xf32> -> vector<8x128xf32>
    %76 = arith.mulf %67, %67 : vector<8x128xf32>
    %77 = arith.subf %71, %76 : vector<8x128xf32>
    %78 = arith.mulf %69, %69 : vector<8x128xf32>
    %79 = arith.subf %73, %78 : vector<8x128xf32>
    %80 = arith.mulf %67, %69 : vector<8x128xf32>
    %81 = arith.subf %75, %80 : vector<8x128xf32>
    %cst_33 = arith.constant 2.000000e+00 : f32
    %82 = vector.broadcast %cst_33 : f32 to vector<8x128xf32>
    %83 = arith.mulf %82, %67 : vector<8x128xf32>
    %84 = arith.mulf %83, %69 : vector<8x128xf32>
    %cst_34 = arith.constant 9.99999974E-5 : f32
    %85 = vector.broadcast %cst_34 : f32 to vector<8x128xf32>
    %86 = arith.addf %84, %85 : vector<8x128xf32>
    %cst_35 = arith.constant 2.000000e+00 : f32
    %87 = vector.broadcast %cst_35 : f32 to vector<8x128xf32>
    %88 = arith.mulf %87, %81 : vector<8x128xf32>
    %cst_36 = arith.constant 8.99999984E-4 : f32
    %89 = vector.broadcast %cst_36 : f32 to vector<8x128xf32>
    %90 = arith.addf %88, %89 : vector<8x128xf32>
    %91 = arith.mulf %86, %90 : vector<8x128xf32>
    %92 = arith.mulf %67, %67 : vector<8x128xf32>
    %93 = arith.mulf %69, %69 : vector<8x128xf32>
    %94 = arith.addf %92, %93 : vector<8x128xf32>
    %cst_37 = arith.constant 9.99999974E-5 : f32
    %95 = vector.broadcast %cst_37 : f32 to vector<8x128xf32>
    %96 = arith.addf %94, %95 : vector<8x128xf32>
    %97 = arith.addf %77, %79 : vector<8x128xf32>
    %cst_38 = arith.constant 8.99999984E-4 : f32
    %98 = vector.broadcast %cst_38 : f32 to vector<8x128xf32>
    %99 = arith.addf %97, %98 : vector<8x128xf32>
    %100 = arith.mulf %96, %99 : vector<8x128xf32>
    %101 = tpu.reciprocal %100 {approx = true} : vector<8x128xf32> -> vector<8x128xf32>
    %102 = arith.mulf %100, %101 : vector<8x128xf32>
    %cst_39 = arith.constant 2.000000e+00 : f32
    %103 = vector.broadcast %cst_39 : f32 to vector<8x128xf32>
    %104 = arith.subf %103, %102 : vector<8x128xf32>
    %105 = arith.mulf %101, %104 : vector<8x128xf32>
    %106 = arith.mulf %91, %105 : vector<8x128xf32>
    %107 = arith.addf %65, %106 : vector<8x128xf32>
    %108 = tpu.iota {dimensions = array<i32: 0>} : vector<8x128xi32>
    %109 = tpu.iota {dimensions = array<i32: 1>} : vector<8x128xi32>
    %c6_i32 = arith.constant 6 : i32
    %110 = vector.broadcast %c6_i32 : i32 to vector<8x128xi32>
    %111 = arith.cmpi slt, %108, %110 : vector<8x128xi32>
    %c6_i32_40 = arith.constant 6 : i32
    %112 = vector.broadcast %c6_i32_40 : i32 to vector<8x128xi32>
    %113 = arith.cmpi slt, %109, %112 : vector<8x128xi32>
    %114 = arith.andi %111, %113 : vector<8x128xi1>
    %115 = arith.extui %114 : vector<8x128xi1> to vector<8x128xi32>
    %116 = arith.sitofp %115 : vector<8x128xi32> to vector<8x128xf32>
    %117 = arith.mulf %107, %116 : vector<8x128xf32>
    %118 = vector.shape_cast %117 : vector<8x128xf32> to vector<1x8x128xf32>
    %cst_41 = arith.constant dense<0.000000e+00> : vector<1xf32>
    %119 = vector.multi_reduction <add>, %118, %cst_41 [1, 2] : vector<1x8x128xf32> to vector<1xf32>
    %120 = vector.shape_cast %119 : vector<1xf32> to vector<1x1x1xf32>
    %121 = vector.extract %120[0, 0, 0] : f32 from vector<1x1x1xf32>
    %122 = tpu.iota {dimensions = array<i32: 1>} : vector<1x8x128xi32>
    %c0_i32 = arith.constant 0 : i32
    %123 = vector.broadcast %c0_i32 : i32 to vector<1x8x128xi32>
    %124 = arith.cmpi eq, %122, %123 : vector<1x8x128xi32>
    %c1_i32 = arith.constant 1 : i32
    %125 = vector.broadcast %c1_i32 : i32 to vector<1x8x128xi32>
    %126 = arith.cmpi eq, %122, %125 : vector<1x8x128xi32>
    %cst_42 = arith.constant 0.000000e+00 : f32
    %127 = vector.broadcast %121 : f32 to vector<1x8x128xf32>
    %128 = vector.broadcast %cst_42 : f32 to vector<1x8x128xf32>
    %129 = arith.select %126, %127, %128 : vector<1x8x128xi1>, vector<1x8x128xf32>
    %130 = vector.broadcast %12 : f32 to vector<1x8x128xf32>
    %131 = arith.select %124, %130, %129 : vector<1x8x128xi1>, vector<1x8x128xf32>
    %c0_43 = arith.constant 0 : index
    %c0_44 = arith.constant 0 : index
    %c0_45 = arith.constant 0 : index
    %132 = vector.load %arg5[%c0_43, %c0_44, %c0_45] : memref<1x8x128xf32, #tpu.memory_space<vmem>>, vector<1x8x128xf32>
    tpu.vector_store %arg5[%c0_43, %c0_44, %c0_45], %131 {strides = array<i32>} : memref<1x8x128xf32, #tpu.memory_space<vmem>>, vector<1x8x128xf32>,
    return
  }
  func.func @transform_0(%arg0: i32) -> (i32, i32, i32) {
    %c0_i32 = arith.constant 0 : i32
    %c0_i32_0 = arith.constant 0 : i32
    %c0_i32_1 = arith.constant 0 : i32
    return %arg0, %c0_i32, %c0_i32_0 : i32, i32, i32
  }
  func.func @transform_1(%arg0: i32) -> (i32, i32, i32) {
    %c0_i32 = arith.constant 0 : i32
    %c0_i32_0 = arith.constant 0 : i32
    %c0_i32_1 = arith.constant 0 : i32
    return %arg0, %c0_i32, %c0_i32_0 : i32, i32, i32
  }
  func.func @transform_2(%arg0: i32) -> (i32, i32) {
    %c0_i32 = arith.constant 0 : i32
    %c0_i32_0 = arith.constant 0 : i32
    %c0_i32_1 = arith.constant 0 : i32
    return %c0_i32, %c0_i32_0 : i32, i32
  }
  func.func @transform_3(%arg0: i32) -> (i32, i32) {
    %c0_i32 = arith.constant 0 : i32
    %c0_i32_0 = arith.constant 0 : i32
    %c0_i32_1 = arith.constant 0 : i32
    return %c0_i32, %c0_i32_0 : i32, i32
  }
  func.func @transform_4(%arg0: i32) -> (i32, i32, i32) {
    %c0_i32 = arith.constant 0 : i32
    %c0_i32_0 = arith.constant 0 : i32
    %c0_i32_1 = arith.constant 0 : i32
    return %arg0, %c0_i32, %c0_i32_0 : i32, i32, i32
  }
}

</mosaic_0001>

<bundles_post_ra>
// kernel: tpu_custom_call.1
= control target key start
LH: loop header
LB: loop body
LE: loop exit
PB: predicated region body
PF: predicated region fallthrough
CT: control target
= control target key end

     0   :  { %s1627_s0 = inlined_call_operand.hbm [shape: f32[8,16,16], index: 0, kind: input, shape index: {}]   ;;  %s1628_s1 = inlined_call_operand.hbm [shape: f32[8,16,16], index: 1, kind: input, shape index: {}]   ;;  %s1629_s2 = inlined_call_operand.hbm [shape: f32[16,128], index: 2, kind: input, shape index: {}]   ;;  %s1630_s3 = inlined_call_operand.hbm [shape: f32[8,16], index: 3, kind: input, shape index: {}]   ;;  %s1631_s4 = inlined_call_operand.hbm [shape: f32[4,8,128], index: 4, kind: output, shape index: {}]  }
   0x1   :  { %1636 = sst [smem:[#allocation16_spill]] %s1627_s0 }
   0x2   :  { %1637 = sst [smem:[#allocation17_spill]] %s1629_s2 }
   0x3   :  { %1638 = sst [smem:[#allocation18_spill]] %s1630_s3 }
   0x4   :  { %9 = vsyncpa [#allocation3], 0 }
   0x5   :  { %11 = vsyncpa [#allocation3 + $0x1], 0 }
   0x6   :  { %12 = vsyncpa [#allocation6], 0 }
   0x7   :  { %14 = vsyncpa [#allocation6 + $0x1], 0 }
   0x8   :  { %15 = vsyncpa [#allocation9], 0 }
   0x9   :  { %16 = vsyncpa [#allocation4], 0 }
   0xa   :  { %18 = vsyncpa [#allocation4 + $0x1], 0  ;;  %s1382_s15 = smov 0   ;;  %s1384_s16 = smov 0  }
   0xb   :  { %s1386_s17 = smov 0   ;;  %s1388_s18 = smov 0  }
   0xc LB: > { %s1403_s19 = sadd.s32 4294967295, %s1350_s18   ;;  %s1003_s20 = sadd.s32 4294967294, %s1350_s18   ;;  %s1350_s18 = sphi %s1388_s18, %s1652_s18   ;;  %s1346_s17 = sphi %s1386_s17, %s1651_s17   ;;  %s1342_s16 = sphi %s1384_s16, %s1650_s16   ;;  %s1338_s15 = sphi %s1382_s15, %s1649_s15  }
   0xd   : > { %p44_p0 = scmp.ne.s32.totalorder %s1342_s16, %s1338_s15  ;;  %p45_p1 = scmp.eq.s32.totalorder %s1403_s19, 0 }
   0xe   : > { %p136_p2 = scmp.eq.s32.totalorder %s1403_s19, 3  ;;  %p142_p3 = scmp.eq.s32.totalorder %s1003_s20, 3 }
   0xf   : > { %p1412_p4 = por %p45_p1, %p44_p0  ;;  %p1004_p5 = scmp.ge.s32.totalorder %s1350_s18, 1 }
  0x10   : > { %p1417_p6 = por %p142_p3, %p44_p0  ;;  %p149_p7 = scmp.lt.s32.totalorder %s1350_s18, 5 }
  0x11   : > { %s1641_s2 = sld [smem:[#allocation17_spill]]  ;;  %s1352_s27 = smov [#allocation7]  }
  0x12   : > { %p1425_p8 = pnand %p1004_p5, %p149_p7  ;;  %s162_s28 = sshll.u32 %s1352_s27, 4  ;;  %s163_s28 = int_to_ptr.vmem [resolvable:$true] %s162_s28 }
  0x13   : > { %s1643_s3 = sld [smem:[#allocation18_spill]]  ;;  %s1632_s6 = smov 128  }
  0x14   : > { %p1079_p9 = pneg %p1425_p8  ;;  %s1634_s7 = smov 8  }
  0x15   : > { %s1355_s8 = smov [#allocation8]   ;;  %s1440_s10 = sadd.s32 1, %s1350_s18  }
  0x16   : > { %p1080_p10 = pnand %p1079_p9, %p45_p1  ;;  %s177_s9 = sshll.u32 %s1355_s8, 4  ;;  %s178_s9 = int_to_ptr.vmem [resolvable:$true] %s177_s9 }
  0x17   : > { %s160_s25 = sshll.u32 %s1641_s2, 4  ;;  %s31_s11 = sadd.s32 1, %s1346_s17  ;;  %s161_s25 = int_to_ptr.hbm [resolvable:$true] %s160_s25 }
  0x18   : > { %1082 = dma.hbm_to_vmem [thread:$0]  (!%p1080_p10), %s161_s25, 256, %s163_s28, [#allocation6], %s1632_s6, %s1632_s6, %s1634_s7  }
  0x19   : > { %s175_s5 = sshll.u32 %s1643_s3, 4  ;;  %s28_s12 = ssub.s32 %s1350_s18, %s1440_s10  ;;  %s176_s5 = int_to_ptr.hbm [resolvable:$true] %s175_s5 }
  0x1a   : > { %1085 = dma.hbm_to_vmem [thread:$0]  (!%p1080_p10), %s176_s5, 128, %s178_s9, [#allocation9]  }
  0x1b   : > { %p38_p11 = scmp.ne.s32.totalorder %s1346_s17, %s1342_s16  ;;  %p29_p12 = scmp.eq.s32.totalorder %s28_s12, 0 }
  0x1c   : > { %p39_p13 = scmp.eq.s32.totalorder %s1350_s18, 0  ;;  %p1099_p3 = scmp.lt.s32.totalorder %s1350_s18, 4 }
  0x1d   : > { %p1450_p0 = por %p136_p2, %p38_p11  ;;  %s188_s20 = sand.u32 1, %s1346_s17  }
  0x1e   : > { %s1456_s14 = scalar_select %p29_p12, %s1346_s17, %s31_s11  }
  0x1f   : > { %p40_p5 = por %p39_p13, %p38_p11  ;;  %s1459_s23 = sshll.u32 %s188_s20, 5 }
  0x20   : > { %s1058_s24 = sshll.u32 %s1350_s18, 5  ;;  %s1645_s0 = sld [smem:[#allocation16_spill]] }
  0x21   : > { %s192_s29 = scalar_lea.vmem [#allocation2], %s1459_s23  ;;  %p1466_p2 = pnand %p1099_p3, %p40_p5 }
  0x22   : > { %s201_s30 = sshll.u32 %s192_s29, 4  ;;  %s221_s12 = scalar_lea.hbm %s1628_s1, %s1058_s24  ;;  %s202_s30 = int_to_ptr.vmem [resolvable:$true] %s201_s30 }
  0x23   : > { %s222_s6 = sshll.u32 %s221_s12, 4  ;;  %s189_s7 = scalar_lea.sflag [#allocation3], %s188_s20  ;;  %s223_s6 = int_to_ptr.hbm [resolvable:$true] %s222_s6 }
  0x24   : > { %p1216_p9 = pneg %p1466_p2 }
  0x26   : > { %s198_s28 = scalar_lea.hbm %s1645_s0, %s1058_s24  ;;  %s1219_s29 = scalar_lea.hbm %s1645_s0, 128 }
  0x27   : > { %s199_s5 = sshll.u32 %s198_s28, 4  ;;  %s200_s5 = int_to_ptr.hbm [resolvable:$true] %s199_s5 }
  0x28   : > { %s1212_s2 = sshra.s32 %s200_s5, 4  ;;  %s1213_s2 = int_to_ptr.hbm [resolvable:$true] %s1212_s2 }
  0x29   : > { %s1214_s25 = scalar_lea.hbm %s1213_s2, 32  ;;  %p1220_p12 = scmp.lt.s32.totalorder %s1213_s2, %s1645_s0 }
  0x2a   : > { %p1215_p7 = scmp.ne.s32.totalorder %s1213_s2, %s1214_s25  ;;  %p1221_p13 = scmp.lt.s32.totalorder %s1219_s29, %s1214_s25 }
  0x2c   : > { %p1217_p10 = pnand %p1216_p9, %p1215_p7  ;;  %p1222_p3 = por %p1221_p13, %p1220_p12 }
  0x2e   : > { %p1218_p11 = pneg %p1217_p10 }
  0x30   : > { %p1223_p5 = pnand %p1222_p3, %p1218_p11 }
  0x32   : > { %1226 = shalt.err (!%p1223_p5)
}
  0x33   : > { %s1647_s20 = smov 8   ;;  %s1648_s24 = smov 128  }
  0x34   : > { %1089 = dma.hbm_to_vmem [thread:$0]  (!%p1466_p2), %s200_s5, 512, %s202_s30, %s189_s7, %s1648_s24, %s1648_s24, %s1647_s20  }
  0x35   : > { %s215_s12 = scalar_lea.vmem [#allocation5], %s1459_s23  ;;  %s211_s28 = sand.u32 1, %s1350_s18  }
  0x36   : > { %s224_s27 = sshll.u32 %s215_s12, 4  ;;  %s212_s9 = scalar_lea.sflag [#allocation6], %s211_s28  ;;  %s225_s27 = int_to_ptr.vmem [resolvable:$true] %s224_s27 }
  0x37   : > { %s1242_s2 = sshra.s32 %s223_s6, 4  ;;  %s1249_s0 = scalar_lea.hbm %s1628_s1, 128  ;;  %s1243_s2 = int_to_ptr.hbm [resolvable:$true] %s1242_s2 }
  0x38   : > { %s1244_s25 = scalar_lea.hbm %s1243_s2, 32  ;;  %p1250_p12 = scmp.lt.s32.totalorder %s1243_s2, %s1628_s1 }
  0x39   : > { %p1245_p7 = scmp.ne.s32.totalorder %s1243_s2, %s1244_s25  ;;  %p1251_p13 = scmp.lt.s32.totalorder %s1249_s0, %s1244_s25 }
  0x3b   : > { %p1247_p10 = pnand %p1245_p7, %p1216_p9  ;;  %p1252_p3 = por %p1251_p13, %p1250_p12 }
  0x3d   : > { %p1248_p11 = pneg %p1247_p10 }
  0x3f   : > { %p1253_p5 = pnand %p1252_p3, %p1248_p11 }
  0x41   : > { %1256 = shalt.err (!%p1253_p5)
}
  0x42   : > { %1092 = dma.hbm_to_vmem [thread:$0]  (!%p1466_p2), %s223_s6, 512, %s225_s27, %s212_s9, %s1648_s24, %s1648_s24, %s1647_s20  }
  0x43   : > { %236 = sbr.rel (%p1425_p8) target bundleno = 604 (0x25c), region = 36  ;;  %s1508_s23 = sand.u32 (!%p1425_p8), 1, %s1342_s16  }
  0x44   : > { %s1017_s3 = sshll.u32 (!%p1425_p8), %s1508_s23, 5  ;;  %s239_s0 = scalar_lea.sflag (!%p1425_p8), [#allocation3], %s1508_s23 }
  0x45   : > { %s1512_s30 = scalar_lea.vmem (!%p1425_p8), [#allocation2], %s1017_s3 }
  0x48   : > { %1317 = dma.done.wait (%p1412_p4), %s239_s0, 512  }
  0x49   : > { %1319 = vsyncadd (%p1412_p4), %s239_s0, 4294966784  ;;  %s248_s6 = sand.u32 1, %s1403_s19   ;;  %s252_s5 = scalar_lea.vmem [#allocation5], %s1017_s3 }
  0x4a   : > { %s249_s26 = scalar_lea.sflag [#allocation6], %s248_s6 }
  0x4b   : > { %1321 = dma.done.wait (%p1412_p4), %s249_s26, 512  }
  0x4c   : > { %1323 = vsyncadd (%p1412_p4), %s249_s26, 4294966784 }
  0x4d   : > { %1325 = dma.done.wait (%p45_p1), [#allocation6], 256  }
  0x4e   : > { %1327 = vsyncadd (%p45_p1), [#allocation6], 4294967040 }
  0x4f   : > { %1329 = dma.done.wait (%p45_p1), [#allocation9], 128  }
  0x50   : > { %1331 = vsyncadd (%p45_p1), [#allocation9], 4294967168  ;;  %v304_v0 = vld [vmem:[#allocation7 + $0x8] sm:$0xff]  ;;  %v303_v1 = vld [vmem:[#allocation7] sm:$0xff]  ;;  %vm366_vm0 = vcmask 130048   ;;  %s1021_s21 = sshll.u32 %s1508_s23, 3 }
  0x51   : > { %v295_v2 = vld [vmem:[%s1512_s30] sm:$0xff]  ;;  %409 = vmatpush.msra.mxu0 %v304_v0  ;;  %450 = vmatpush.msra.mxu1 %v304_v0  ;;  %v296_v5 = vld [vmem:[%s1512_s30 + $0x8] sm:$0xff]  ;;  %v297_v9 = vld [vmem:[%s1512_s30 + $0x10] sm:$0xff]  ;;  %s1054_s8 = sshll.u32 %s1403_s19, 3  ;;  %s292_s27 = scalar_lea.vmem [#allocation10], %s1021_s21 }
  0x52   : > { %v299_v3 = vld [vmem:[%s252_s5] sm:$0xff]  ;;  %v465_v4 = vmul.f32 %v295_v2, %v295_v2  ;;  %v300_v6 = vld [vmem:[%s252_s5 + $0x8] sm:$0xff]  ;;  %495 = vmatpush.msra.mxu2 %v304_v0  ;;  %540 = vmatpush.msra.mxu3 %v304_v0  ;;  %v301_v10 = vld [vmem:[%s252_s5 + $0x10] sm:$0xff]  ;;  %v466_v16 = vmul.f32 %v296_v5, %v296_v5  ;;  %v467_v18 = vmul.f32 %v297_v9, %v297_v9  ;;  %s886_s12 = scalar_lea.hbm %s1631_s4, %s1054_s8  ;;  %s888_s28 = sshll.u32 %s292_s27, 4  ;;  %s889_s28 = int_to_ptr.vmem [resolvable:$true] %s888_s28 }
  0x53   : > { %v1533_v7 = vsub.f32 %v295_v2, %v299_v3  ;;  %v1535_v8 = vsub.f32 %v296_v5, %v300_v6  ;;  %410 = vmatpush.msra.mxu0 %v303_v1  ;;  %451 = vmatpush.msra.mxu1 %v303_v1  ;;  %v510_v11 = vmul.f32 %v299_v3, %v299_v3  ;;  %v298_v13 = vld [vmem:[%s1512_s30 + $0x18] sm:$0xff]  ;;  %v305_v32 = vld [vmem:[#allocation8] sm:$0xff]  ;;  %s890_s2 = sshll.u32 %s886_s12, 4  ;;  %s876_s19 = scalar_lea.sflag [#allocation4], %s1508_s23  ;;  %s891_s2 = int_to_ptr.hbm [resolvable:$true] %s890_s2 }
  0x54   : > { %v1538_v12 = vsub.f32 %v297_v9, %v301_v10  ;;  %v302_v14 = vld [vmem:[%s252_s5 + $0x18] sm:$0xff]  ;;  %496 = vmatpush.msra.mxu2 %v303_v1  ;;  %1022 = vmatmul.msk.f32.vlgmr.msra.gmra.mxu0 %vm366_vm0, %v295_v2  ;;  %v511_v17 = vmul.f32 %v300_v6, %v300_v6  ;;  %v512_v19 = vmul.f32 %v301_v10, %v301_v10  ;;  %s1286_s29 = sshra.s32 %s891_s2, 4  ;;  %s1292_s0 = scalar_lea.hbm %s1631_s4, 32  ;;  %s1287_s29 = int_to_ptr.hbm [resolvable:$true] %s1286_s29 }
  0x55   : > { %v1542_v15 = vsub.f32 %v298_v13, %v302_v14  ;;  %1026 = vmatmul.msk.f32.vlgmr.msra.gmra.mxu1 %vm366_vm0, %v299_v3  ;;  %1030 = vmatmul.msk.f32.vlgmr.msra.gmra.mxu2 %vm366_vm0, %v465_v4  ;;  %v468_v20 = vmul.f32 %v298_v13, %v298_v13  ;;  %v513_v21 = vmul.f32 %v302_v14, %v302_v14  ;;  %s1288_s11 = scalar_lea.hbm %s1287_s29, 8  ;;  %p1293_p2 = scmp.lt.s32.totalorder %s1287_s29, %s1631_s4 }
  0x56   : > { %585 = vmatpush.msrb.mxu0 %v304_v0  ;;  %541 = vmatpush.msra.mxu3 %v303_v1  ;;  %v555_v22 = vmul.f32 %v299_v3, %v295_v2  ;;  %v556_v23 = vmul.f32 %v300_v6, %v296_v5  ;;  %v557_v24 = vmul.f32 %v301_v10, %v297_v9  ;;  %p1289_p1 = scmp.ne.s32.totalorder %s1287_s29, %s1288_s11  ;;  %p1294_p9 = scmp.lt.s32.totalorder %s1292_s0, %s1288_s11 }
  0x57   : > { %1034 = vmatmul.msk.f32.vlgmr.msra.gmra.mxu3 %vm366_vm0, %v510_v11  ;;  %v558_v25 = vmul.f32 %v302_v14, %v298_v13  ;;  %v310_v47 = vmul.f32 %v1533_v7, %v1533_v7  ;;  %v311_v48 = vmul.f32 %v1535_v8, %v1535_v8  ;;  %v312_v49 = vmul.f32 %v1538_v12, %v1538_v12 }
  0x58   : > { %586 = vmatpush.msrb.mxu0 %v303_v1  ;;  %v313_v51 = vmul.f32 %v1542_v15, %v1542_v15  ;;  %p1290_p4 = pnand %p1289_p1, %p1450_p0  ;;  %p1295_p7 = por %p1294_p9, %p1293_p2 }
  0x59   : > { %v314_v50 = vadd.f32 1e-06, %v310_v47  ;;  %v315_v52 = vadd.f32 1e-06, %v311_v48  ;;  %v316_v53 = vadd.f32 1e-06, %v312_v49 }
  0x5a   : > { %v1581_v54 = vadd.f32 1e-06, %v313_v51  ;;  %p1291_p8 = pneg %p1290_p4 }
  0x5b   : > { %1140 = vrsqrt.f32 %v314_v50  ;;  %vm325_vm1 = vcmp.eq.f32.partialorder %v314_v50, inf  ;;  %vm337_vm2 = vcmp.eq.f32.partialorder %v315_v52, inf  ;;  %vm327_vm3 = vcmp.eq.f32.partialorder %v314_v50, 0.0 }
  0x5c   : > { %1023 = vmatmul.msk.f32.gmra.mxu0 %vm366_vm0, %v296_v5  ;;  %1142 = vrsqrt.f32 %v315_v52  ;;  %vm339_vm4 = vcmp.eq.f32.partialorder %v315_v52, 0.0  ;;  %vm349_vm5 = vcmp.eq.f32.partialorder %v316_v53, inf  ;;  %vm351_vm6 = vcmp.eq.f32.partialorder %v316_v53, 0.0  ;;  %p1296_p10 = pnand %p1295_p7, %p1291_p8 }
  0x5d   : > { %1027 = vmatmul.msk.f32.gmra.mxu1 %vm366_vm0, %v300_v6  ;;  %1031 = vmatmul.msk.f32.gmra.mxu2 %vm366_vm0, %v466_v16  ;;  %1144 = vrsqrt.f32 %v316_v53  ;;  %vm361_vm7 = vcmp.eq.f32.partialorder %v1581_v54, inf  ;;  %vm363_vm8 = vcmp.eq.f32.partialorder %v1581_v54, 0.0 }
  0x5e   : > { %1146 = vrsqrt.f32 %v1581_v54 }
  0x5f   : > { %1035 = vmatmul.msk.f32.gmra.mxu3 %vm366_vm0, %v511_v17 }
  0x61   : > { %v1141_v55 = vpop.eup %1140 }
  0x62   : > { %v1143_v56 = vpop.eup %1142  ;;  %v319_v57 = vmul.f32 %v1141_v55, %v314_v50 }
  0x63   : > { %v1145_v58 = vpop.eup %1144  ;;  %v331_v59 = vmul.f32 %v1143_v56, %v315_v52 }
  0x64   : > { %1024 = vmatmul.msk.f32.gmra.mxu0 %vm366_vm0, %v297_v9  ;;  %v320_v60 = vmul.f32 %v1141_v55, %v319_v57  ;;  %v1147_v61 = vpop.eup %1146  ;;  %v343_v63 = vmul.f32 %v1145_v58, %v316_v53 }
  0x65   : > { %1032 = vmatmul.msk.f32.gmra.mxu2 %vm366_vm0, %v467_v18  ;;  %1028 = vmatmul.msk.f32.gmra.mxu1 %vm366_vm0, %v301_v10  ;;  %v332_v62 = vmul.f32 %v1143_v56, %v331_v59  ;;  %v355_v1 = vmul.f32 %v1147_v61, %v1581_v54 }
  0x66   : > { %v321_v0 = vmul.f32 0.5, %v320_v60  ;;  %v344_v3 = vmul.f32 %v1145_v58, %v343_v63 }
  0x67   : > { %1036 = vmatmul.msk.f32.gmra.mxu3 %vm366_vm0, %v512_v19  ;;  %v333_v2 = vmul.f32 0.5, %v332_v62  ;;  %v356_v5 = vmul.f32 %v1147_v61, %v355_v1  ;;  %v340_v19 = vand.u32 2147483648, %v315_v52 }
  0x68   : > { %v322_v4 = vsub.f32 1.5, %v321_v0  ;;  %v345_v7 = vmul.f32 0.5, %v344_v3 }
  0x69   : > { %v334_v6 = vsub.f32 1.5, %v333_v2  ;;  %v357_v9 = vmul.f32 0.5, %v356_v5 }
  0x6a   : > { %v323_v8 = vmul.f32 %v1141_v55, %v322_v4  ;;  %v346_v11 = vsub.f32 1.5, %v345_v7 }
  0x6b   : > { %v335_v10 = vmul.f32 %v1143_v56, %v334_v6  ;;  %v358_v17 = vsub.f32 1.5, %v357_v9 }
  0x6c   : > { %1025 = vmatmul.msk.f32.gmra.mxu0 %vm366_vm0, %v298_v13  ;;  %v324_v12 = vmul.f32 %v323_v8, %v314_v50  ;;  %v328_v13 = vand.u32 2147483648, %v314_v50  ;;  %v849_v8 = vlaneseq }
  0x6d   : > { %1033 = vmatmul.msk.f32.gmra.mxu2 %vm366_vm0, %v468_v20  ;;  %1029 = vmatmul.msk.f32.gmra.mxu1 %vm366_vm0, %v302_v14  ;;  %v336_v14 = vmul.f32 %v335_v10, %v315_v52  ;;  %v347_v20 = vmul.f32 %v1145_v58, %v346_v11 }
  0x6e   : > { %v326_v16 = vsel %vm325_vm1, %v314_v50, %v324_v12 }
  0x6f   : > { %1037 = vmatmul.msk.f32.gmra.mxu3 %vm366_vm0, %v513_v21  ;;  %v338_v18 = vsel %vm337_vm2, %v315_v52, %v336_v14  ;;  %v329_v21 = vsel %vm327_vm3, %v328_v13, %v326_v16  ;;  %v850_v14 = vshrl.u32 %v849_v8, 7  ;;  %v852_v16 = vand.u32 127, %v849_v8 }
  0x71   : > { %vm853_vm9 = vcmp.lt.s32.totalorder %v850_v14, 6  ;;  %vm854_vm10 = vcmp.lt.s32.totalorder %v852_v16, 6  ;;  %vm869_vm12 = vcmp.eq.s32.totalorder %v850_v14, 1  ;;  %vm868_vm13 = vcmp.eq.s32.totalorder %v850_v14, 0 }
  0x72   : > { %vm855_vm11 = vmand %vm853_vm9, %vm854_vm10 }
  0x74   : > { %1038 = vmatmul.msk.f32.vlgmr.msrb.gmra.mxu0 %vm366_vm0, %v555_v22  ;;  %v341_v22 = vsel %vm339_vm4, %v340_v19, %v338_v18 }
  0x7c   : > { %1039 = vmatmul.msk.f32.gmra.mxu0 %vm366_vm0, %v556_v23  ;;  %v352_v23 = vand.u32 2147483648, %v316_v53 }
  0x84   : > { %1040 = vmatmul.msk.f32.gmra.mxu0 %vm366_vm0, %v557_v24 }
  0x8c   : > { %1041 = vmatmul.msk.f32.gmra.mxu0 %vm366_vm0, %v558_v25  ;;  %v348_v25 = vmul.f32 %v347_v20, %v316_v53 }
  0xd1   : > { %v412_v26 = vpop.f32.mrf.mxu0 }
  0xd2   : > { %v453_v27 = vpop.f32.mrf.mxu1 }
  0xd8   : > { %v498_v28 = vpop.f32.mrf.mxu2 }
  0xd9   : > { %v415_v29 = vpop.f32.mrf.mxu0 }
  0xda   : > { %v456_v30 = vpop.f32.mrf.mxu1  ;;  %617 = vmatpush.msrb.mxu1 %v415_v29  ;;  %v543_v31 = vpop.f32.mrf.mxu3 }
  0xdb   : > { %637 = vmatpush.msrb.mxu2 %v456_v30  ;;  %v350_v30 = vsel %vm349_vm5, %v316_v53, %v348_v25 }
  0xdc   : > { %618 = vmatpush.msrb.mxu1 %v412_v26  ;;  %v359_v26 = vmul.f32 %v1147_v61, %v358_v17 }
  0xdd   : > { %638 = vmatpush.msrb.mxu2 %v453_v27  ;;  %1042 = vmatmul.msk.f32.vlgmr.msrb.gmra.mxu1 %vm366_vm0, %v305_v32  ;;  %v364_v27 = vand.u32 2147483648, %v1581_v54 }
  0xde   : > { %1043 = vmatmul.msk.f32.vlgmr.msrb.gmra.mxu2 %vm366_vm0, %v305_v32 }
  0xe0   : > { %v501_v33 = vpop.f32.mrf.mxu2 }
  0xe1   : > { %657 = vmatpush.msrb.mxu3 %v501_v33  ;;  %v418_v34 = vpop.f32.mrf.mxu0  ;;  %v353_v33 = vsel %vm351_vm6, %v352_v23, %v350_v30 }
  0xe2   : > { %v546_v35 = vpop.f32.mrf.mxu3  ;;  %v459_v36 = vpop.f32.mrf.mxu1 }
  0xe3   : > { %658 = vmatpush.msrb.mxu3 %v498_v28  ;;  %677 = vmatpush.msra.mxu1 %v546_v35  ;;  %v367_v28 = vsel %vm366_vm0, %v329_v21, 0.0 }
  0xe4   : > { %1044 = vmatmul.msk.f32.vlgmr.msrb.gmra.mxu3 %vm366_vm0, %v305_v32 }
  0xe5   : > { %678 = vmatpush.msra.mxu1 %v543_v31  ;;  %v360_v31 = vmul.f32 %v359_v26, %v1581_v54 }
  0xe6   : > { %1045 = vmatmul.msk.f32.vlgmr.msra.gmra.mxu1 %vm366_vm0, %v305_v32 }
  0xe7   : > { %v362_v35 = vsel %vm361_vm7, %v1581_v54, %v360_v31  ;;  %v1356_v31 = vmov 0.0  }
  0xe8   : > { %v504_v41 = vpop.f32.mrf.mxu2 }
  0xe9   : > { %v421_v37 = vpop.f32.mrf.mxu0 }
  0xea   : > { %740 = vmatpush.msra.mxu3 %v421_v37  ;;  %v549_v38 = vpop.f32.mrf.mxu3  ;;  %v462_v39 = vpop.f32.mrf.mxu1 }
  0xeb   : > { %760 = vmatpush.msrb.mxu1 %v462_v39  ;;  %v365_v39 = vsel %vm363_vm8, %v364_v27, %v362_v35 }
  0xec   : > { %741 = vmatpush.msra.mxu3 %v418_v34 }
  0xed   : > { %1047 = vmatmul.msk.f32.vlgmr.msra.gmra.mxu3 %vm366_vm0, %v305_v32  ;;  %761 = vmatpush.msrb.mxu1 %v459_v36  ;;  %v370_v36 = vsel %vm366_vm0, %v353_v33, 0.0 }
  0xee   : > { %1048 = vmatmul.msk.f32.vlgmr.msrb.gmra.mxu1 %vm366_vm0, %v305_v32 }
  0xf0   : > { %v507_v44 = vpop.f32.mrf.mxu2 }
  0xf1   : > { %v588_v40 = vpop.f32.mrf.mxu0 }
  0xf2   : > { %v552_v42 = vpop.f32.mrf.mxu3 }
  0xf3   : > { %800 = vmatpush.msrb.mxu3 %v552_v42  ;;  %v372_v42 = vsel %vm366_vm0, %v365_v39, 0.0 }
  0xf5   : > { %801 = vmatpush.msrb.mxu3 %v549_v38 }
  0xf6   : > { %1050 = vmatmul.msk.f32.vlgmr.msrb.gmra.mxu3 %vm366_vm0, %v305_v32 }
  0xf9   : > { %v591_v43 = vpop.f32.mrf.mxu0 }
  0xfa   : > { %697 = vmatpush.msra.mxu2 %v591_v43 }
  0xfc   : > { %698 = vmatpush.msra.mxu2 %v588_v40 }
  0xfd   : > { %1046 = vmatmul.msk.f32.vlgmr.msra.gmra.mxu2 %vm366_vm0, %v305_v32 }
  0xfe   : > { %780 = vmatpush.msrb.mxu2 %v507_v44 }
 0x100   : > { %781 = vmatpush.msrb.mxu2 %v504_v41 }
 0x101   : > { %v594_v45 = vpop.f32.mrf.mxu0 }
 0x105   : > { %1049 = vmatmul.msk.f32.vlgmr.msrb.gmra.mxu2 %vm366_vm0, %v305_v32 }
 0x109   : > { %v597_v46 = vpop.f32.mrf.mxu0 }
 0x10a   : > { %820 = vmatpush.msra.mxu1 %v597_v46 }
 0x10c   : > { %821 = vmatpush.msra.mxu1 %v594_v45 }
 0x10d   : > { %1051 = vmatmul.msk.f32.vlgmr.msra.gmra.mxu1 %vm366_vm0, %v305_v32  ;;  %v368_v32 = vsel %vm366_vm0, %v341_v22, 0.0 }
 0x10e   : > { %v369_v34 = vadd.f32 %v368_v32, %v367_v28  ;;  %v1052_v32 = vsel %vm855_vm11, 1.0, %v1356_v31 }
 0x110   : > { %v371_v40 = vadd.f32 %v370_v36, %v369_v34 }
 0x112   : > { %v373_v43 = vadd.f32 %v372_v42, %v371_v40 }
 0x114   : > { %374 = vadd.xlane.f32.xlu0 %v373_v43 }
 0x15a   : > { %v620_v15 = vpop.f32.mrf.mxu1 }
 0x15b   : > { %v703_v37 = vmul.f32 %v620_v15, %v620_v15  ;;  %v709_v5 = vmul.f32 2.0, %v620_v15 }
 0x161   : > { %v640_v29 = vpop.f32.mrf.mxu2 }
 0x162   : > { %v705_v38 = vmul.f32 %v640_v29, %v640_v29  ;;  %v707_v62 = vmul.f32 %v640_v29, %v620_v15  ;;  %v710_v11 = vmul.f32 %v709_v5, %v640_v29 }
 0x163   : > { %v680_v41 = vpop.f32.mrf.mxu1 }
 0x164   : > { %v706_v46 = vsub.f32 %v680_v41, %v705_v38  ;;  %v715_v47 = vadd.f32 %v705_v38, %v703_v37  ;;  %v711_v20 = vadd.f32 0.0001, %v710_v11 }
 0x166   : > { %v716_v51 = vadd.f32 0.0001, %v715_v47 }
 0x167   : > { %v660_v24 = vpop.f32.mrf.mxu3 }
 0x168   : > { %v704_v45 = vsub.f32 %v660_v24, %v703_v37 }
 0x16a   : > { %v717_v48 = vadd.f32 %v706_v46, %v704_v45 }
 0x16b   : > { %v763_v50 = vpop.f32.mrf.mxu1 }
 0x16c   : > { %v718_v52 = vadd.f32 0.0009, %v717_v48  ;;  %v828_v55 = vmul.f32 %v763_v50, %v763_v50 }
 0x16e   : > { %v719_v56 = vmul.f32 %v718_v52, %v716_v51 }
 0x170   : > { %v743_v44 = vpop.f32.mrf.mxu3  ;;  %1148 = vrcp.f32 %v719_v56 }
 0x171   : > { %v826_v54 = vmul.f32 %v743_v44, %v743_v44  ;;  %v830_v3 = vmul.f32 %v763_v50, %v743_v44  ;;  %v832_v10 = vmul.f32 2.0, %v743_v44 }
 0x173   : > { %v838_v60 = vadd.f32 %v828_v55, %v826_v54  ;;  %v833_v18 = vmul.f32 %v832_v10, %v763_v50 }
 0x175   : > { %v839_v63 = vadd.f32 0.0001, %v838_v60  ;;  %v834_v24 = vadd.f32 0.0001, %v833_v18 }
 0x176   : > { %v1149_v7 = vpop.eup %1148 }
 0x177   : > { %v721_v12 = vmul.f32 %v1149_v7, %v719_v56 }
 0x179   : > { %v803_v53 = vpop.f32.mrf.mxu3  ;;  %v722_v21 = vsub.f32 2.0, %v721_v12 }
 0x17a   : > { %v829_v57 = vsub.f32 %v803_v53, %v828_v55 }
 0x17b   : > { %v723_v27 = vmul.f32 %v1149_v7, %v722_v21 }
 0x180   : > { %v700_v49 = vpop.f32.mrf.mxu2 }
 0x181   : > { %v708_v2 = vsub.f32 %v700_v49, %v707_v62 }
 0x183   : > { %v712_v9 = vmul.f32 2.0, %v708_v2 }
 0x185   : > { %v713_v17 = vadd.f32 0.0009, %v712_v9 }
 0x187   : > { %v714_v15 = vmul.f32 %v713_v17, %v711_v20  ;;  %v375_v35 = vpop.xlane.xlu0 %374 }
 0x188   : > { %v783_v58 = vpop.f32.mrf.mxu2  ;;  %v376_v36 = vrot.slane %v375_v35, 4 }
 0x189   : > { %v827_v59 = vsub.f32 %v783_v58, %v826_v54  ;;  %v724_v29 = vmul.f32 %v723_v27, %v714_v15 }
 0x18a   : > { %v823_v1 = vpop.f32.mrf.mxu1  ;;  %v377_v37 = vadd.f32 %v376_v36, %v375_v35 }
 0x18b   : > { %v840_v61 = vadd.f32 %v829_v57, %v827_v59  ;;  %v831_v6 = vsub.f32 %v823_v1, %v830_v3 }
 0x18c   : > { %v378_v38 = vrot.slane %v377_v37, 2 }
 0x18d   : > { %v841_v0 = vadd.f32 0.0009, %v840_v61  ;;  %v835_v13 = vmul.f32 2.0, %v831_v6 }
 0x18e   : > { %v379_v39 = vadd.f32 %v378_v38, %v377_v37 }
 0x18f   : > { %v842_v4 = vmul.f32 %v841_v0, %v839_v63  ;;  %v836_v23 = vadd.f32 0.0009, %v835_v13 }
 0x190   : > { %v380_v40 = vrot.slane %v379_v39, 1 }
 0x191   : > { %1150 = vrcp.f32 %v842_v4  ;;  %v837_v26 = vmul.f32 %v836_v23, %v834_v24 }
 0x192   : > { %v381_v41 = vadd.f32 %v380_v40, %v379_v39 }
 0x194   : > { %1061 = vpush %v381_v41 }
 0x197   : > { %v1151_v19 = vpop.eup %1150 }
 0x198   : > { %v844_v22 = vmul.f32 %v1151_v19, %v842_v4 }
 0x19a   : > { %v845_v25 = vsub.f32 2.0, %v844_v22 }
 0x19c   : > { %v846_v28 = vmul.f32 %v1151_v19, %v845_v25 }
 0x19e   : > { %v847_v30 = vmul.f32 %v846_v28, %v837_v26 }
 0x1a0   : > { %v848_v33 = vadd.f32 %v847_v30, %v724_v29 }
 0x1a2   : > { %v858_v34 = vmul.f32 %v1052_v32, %v848_v33 }
 0x1a4   : > { %859 = vadd.xlane.f32.xlu0 %v858_v34 }
 0x1c5   : > { %s1062_s9 = spop %1061 }
 0x1c6   : > { %v872_v50 = vstv %s1062_s9 }
 0x217   : > { %v860_v42 = vpop.xlane.xlu0 %859 }
 0x218   : > { %v861_v43 = vrot.slane %v860_v42, 4 }
 0x21a   : > { %v862_v44 = vadd.f32 %v861_v43, %v860_v42 }
 0x21c   : > { %v863_v45 = vrot.slane %v862_v44, 2 }
 0x21e   : > { %v864_v46 = vadd.f32 %v863_v45, %v862_v44 }
 0x220   : > { %v865_v47 = vrot.slane %v864_v46, 1 }
 0x222   : > { %v866_v48 = vadd.f32 %v865_v47, %v864_v46 }
 0x224   : > { %1063 = vpush %v866_v48 }
 0x255   : > { %s1064_s25 = spop %1063 }
 0x256   : > { %v870_v49 = vstv %s1064_s25 }
 0x257   : > { %v871_v51 = vsel %vm869_vm12, %v870_v49, 0.0 }
 0x258   : > { %v873_v52 = vsel %vm868_vm13, %v872_v50, %v871_v51 }
 0x259   : > { %874 = vst [vmem:[%s292_s27] sm:$0xff] %v873_v52 }
 0x25a   : > { %1299 = shalt.err (!%p1296_p10)
}
 0x25b   : > { %1077 = dma.vmem_to_hbm [thread:$0]  (%p1450_p0), %s889_s28, 128, %s891_s2, %s876_s19  }
 0x25c PF: > { %p1102_p11 = scmp.ge.s32.totalorder %s1350_s18, 2  ;;  %s902_s23 = sand.u32 1, %s1338_s15  }
 0x25d   : > { %s903_s26 = scalar_lea.sflag [#allocation4], %s902_s23 }
 0x25e   : > { %p1094_p12 = pnand %p1102_p11, %p1417_p6 }
 0x260   : > { %p1095_p13 = pneg %p1094_p12 }
 0x262   : > { %1333 = dma.done.wait (%p1095_p13), %s903_s26, 128  }
 0x263   : > { %1335 = vsyncadd (%p1095_p13), %s903_s26, 4294967168  ;;  %p21_p3 = scmp.ge.s32.totalorder %s1440_s10, 6   ;;  %s1649_s15 = smov %s1342_s16 }
 0x264   : > { %s1650_s16 = smov %s1346_s17  ;;  %s1651_s17 = smov %s1456_s14 }
 0x265   : > { %s1652_s18 = smov %s1440_s10  ;;  %23 = sbr.rel (!%p21_p3) target bundleno = 12 (0xc), region = 102 }
 0x26a   :  { %909 = vsyncpa [#allocation3], 1 }
 0x26b   :  { %911 = vsyncpa [#allocation3 + $0x1], 1 }
 0x26c   :  { %912 = vsyncpa [#allocation6], 1 }
 0x26d   :  { %914 = vsyncpa [#allocation6 + $0x1], 1 }
 0x26e   :  { %915 = vsyncpa [#allocation9], 1 }
 0x26f   :  { %916 = vsyncpa [#allocation4], 1 }
 0x270   :  { %918 = vsyncpa [#allocation4 + $0x1], 1 }

</bundles_post_ra>
